<compile_context>
chip_gen: v5e
topology: v5e:2x2
jax: 0.10.0
libtpu: 0.0.40
codegen_flags: <defaults>
</compile_context>

<pallas_src>
import functools

import jax
import jax.numpy as jnp
from jax.experimental import pallas as pl
from jax.experimental.pallas import tpu as pltpu


def _round_up(x, m):
    return ((x + m - 1) // m) * m


# ----------------------------- fused Pallas kernel -------------------------- #

def _gnn_fused_kernel(sub_ref, bagw_ref, dm_ref, srcoh_ref, ee_ref,
                      wts_ref, pvec_ref, out_ref, *, num_layer: int,
                      emb_dim: int, eps: float = 1e-5):
    """Full GNN forward: bag embedding + num_layer x (GIN + BN (+ReLU))."""
    d = emb_dim

    # ---- bag embedding: masked mean of gathered sub-token embeddings ----
    # sub_ref: [N, Lp, D] (gathered rows), bagw_ref: [N, Lp, 1] (masked-mean weights)
    x_emb = jnp.sum(sub_ref[...] * bagw_ref[...], axis=1)              # [N, D]

    # ---- graph construction, hoisted once (layer-invariant) ----
    n = x_emb.shape[0]
    adj = jnp.dot(dm_ref[...], srcoh_ref[...],
                  preferred_element_type=jnp.float32)                  # [N, N]
    row = jax.lax.broadcasted_iota(jnp.int32, (n, n), 0)
    col = jax.lax.broadcasted_iota(jnp.int32, (n, n), 1)
    adj = adj + (row == col).astype(jnp.float32)                       # fold self-loop
    edge_agg = jnp.dot(dm_ref[...].astype(jnp.float32), ee_ref[...],
                       preferred_element_type=jnp.float32)             # [N, D]

    h = x_emb
    inv_n = 1.0 / n
    for layer in range(num_layer):                                     # static unroll
        # Packed per-layer params (static slices of the stacked operands).
        w1 = wts_ref[layer, :d, :]          # [D, 2D]
        w2 = wts_ref[layer, d:, :d]         # [2D, D]
        b1 = pvec_ref[layer, 0:1, :]        # [1, 2D]
        b2 = pvec_ref[layer, 1:2, :d]       # [1, D]
        gamma = pvec_ref[layer, 2:3, :d]    # [1, D]
        beta = pvec_ref[layer, 3:4, :d]     # [1, D]

        # GIN add-aggregation (self loop already inside adj) + edge embeddings.
        agg = jnp.dot(adj, h, preferred_element_type=jnp.float32) + edge_agg

        # GIN MLP: Linear(D, 2D) -> ReLU -> Linear(2D, D).
        z = jnp.dot(agg, w1, preferred_element_type=jnp.float32) + b1
        z = jnp.maximum(z, 0.0)
        z = jnp.dot(z, w2, preferred_element_type=jnp.float32) + b2

        # BatchNorm1d (training-mode batch stats over the node axis), f32 math.
        mean = jnp.sum(z, axis=0, keepdims=True) * inv_n
        zc = z - mean
        var = jnp.sum(zc * zc, axis=0, keepdims=True) * inv_n
        h = zc * jax.lax.rsqrt(var + eps) * gamma + beta

        if layer != num_layer - 1:           # ReLU on all but the last GNN layer
            h = jnp.maximum(h, 0.0)
        # dropout with drop_ratio=0 is a no-op.

    # Single merged output slab (one writeback DMA). JK='last'.
    out_ref[0] = h
    out_ref[1] = x_emb


# ------------------------------ JAX wrapper --------------------------------- #

def _vmem_spec():
    return pl.BlockSpec(memory_space=pltpu.MemorySpace.VMEM)


def gnn_forward(tokens, edge_index, edge_attr, params, *, padding_index=0):
    """tokens: [N, L] int32, edge_index: [2, E] int32, edge_attr: [E] int32.
    Returns (node_representation [N, D], x_embedded [N, D])."""
    n, seq_len = tokens.shape
    vocab, d = params["token_emb"].shape
    num_layer, _, hid = params["wts"].shape
    e = edge_index.shape[1]

    # ---- bag-embedding glue (scatter-free, O(N*L*D)) ----
    lp = _round_up(max(seq_len, 1), 8)
    tok = jnp.pad(tokens, ((0, 0), (0, lp - seq_len)),
                  constant_values=padding_index)
    mask = (tok != padding_index).astype(jnp.float32)                  # [N, Lp]
    counts = jnp.maximum(mask.sum(axis=1, keepdims=True), 1.0)         # [N, 1]
    bagw = (mask / counts)[:, :, None]                                 # [N, Lp, 1]
    sub_emb = params["token_emb"][tok]                                 # [N, Lp, D]
    # TODO(synk): move this gather fully in-kernel (scalar-prefetch token ids in
    # SMEM + per-row DMA) once vocab / N are large enough for it to matter.

    # ---- graph glue: zero-padded, bf16 incidence / one-hot matrices ----
    ep = _round_up(max(e, 1), 128)
    pad_e = ep - e
    src = edge_index[0].astype(jnp.int32)
    dst = edge_index[1].astype(jnp.int32)
    src_p = jnp.concatenate([src, jnp.full((pad_e,), n, jnp.int32)])   # pad -> no node
    dst_p = jnp.concatenate([dst, jnp.full((pad_e,), n, jnp.int32)])
    ea_p = jnp.concatenate([edge_attr.astype(jnp.int32),
                            jnp.zeros((pad_e,), jnp.int32)])
    node_ids = jnp.arange(n, dtype=jnp.int32)
    dm = (dst_p[None, :] == node_ids[:, None]).astype(jnp.bfloat16)      # [N, Ep]
    src_oh = (src_p[:, None] == node_ids[None, :]).astype(jnp.bfloat16)  # [Ep, N]
    ee = params["edge_emb"][ea_p]                                        # [Ep, D]

    operands = (sub_emb, bagw, dm, src_oh, ee, params["wts"], params["pvec"])

    # ---- cost hint for XLA scheduling (ints only) ----
    flops = 2 * (n * lp * d + n * ep * n + n * ep * d
                 + num_layer * (n * n * d + n * d * hid + n * hid * d))
    bytes_accessed = sum(int(a.size) * int(jnp.dtype(a.dtype).itemsize)
                         for a in operands) + 2 * n * d * 4
    cost = pl.CostEstimate(flops=int(flops),
                           transcendentals=int(num_layer * d),
                           bytes_accessed=int(bytes_accessed))

    # Explicit scoped-VMEM budget sized from the operand footprint (+headroom).
    vmem_limit = int(min(64 * 1024 * 1024,
                         max(16 * 1024 * 1024, 8 * int(bytes_accessed))))

    kernel = functools.partial(_gnn_fused_kernel,
                               num_layer=int(num_layer), emb_dim=int(d))
    out = pl.pallas_call(
        kernel,
        out_shape=jax.ShapeDtypeStruct((2, n, d), jnp.float32),
        in_specs=[_vmem_spec() for _ in operands],
        out_specs=_vmem_spec(),
        compiler_params=pltpu.CompilerParams(vmem_limit_bytes=vmem_limit),
        cost_estimate=cost,
    )(*operands)

    return out[0], out[1]


# ----------------------------- parameter init ------------------------------- #

def init_params(key, vocab_size, emb_dim, num_layer, num_edge_type):
    hid = 2 * emb_dim
    keys = jax.random.split(key, 2 + 2 * num_layer)

    w1 = jnp.stack([jax.random.normal(keys[2 + 2 * l], (emb_dim, hid), jnp.float32)
                    * (1.0 / emb_dim ** 0.5) for l in range(num_layer)])   # [L, D, 2D]
    w2 = jnp.stack([jax.random.normal(keys[3 + 2 * l], (hid, emb_dim), jnp.float32)
                    * (1.0 / hid ** 0.5) for l in range(num_layer)])       # [L, 2D, D]
    w2_pad = jnp.pad(w2, ((0, 0), (0, 0), (0, hid - emb_dim)))
    wts = jnp.concatenate([w1, w2_pad], axis=1)                            # [L, 3D, 2D]

    b1 = jnp.zeros((num_layer, 1, hid), jnp.float32)
    b2 = jnp.zeros((num_layer, 1, emb_dim), jnp.float32)
    gamma = jnp.ones((num_layer, 1, emb_dim), jnp.float32)
    beta = jnp.zeros((num_layer, 1, emb_dim), jnp.float32)
    padr = lambda a: jnp.pad(a, ((0, 0), (0, 0), (0, hid - emb_dim)))
    pvec = jnp.concatenate([b1, padr(b2), padr(gamma), padr(beta)], axis=1)  # [L, 4, 2D]

    return {
        "token_emb": jax.random.normal(keys[0], (vocab_size, emb_dim), jnp.float32) * 0.1,
        "edge_emb":  jax.random.normal(keys[1], (num_edge_type, emb_dim), jnp.float32) * 0.1,
        # Packed per-layer params:
        #   wts  [L, 3D, 2D]: rows [:D] = W1 (D x 2D); rows [D:] cols [:D] = W2 (2D x D)
        #   pvec [L, 4, 2D] : row 0 = b1; rows 1..3 = b2 / gamma / beta (zero-padded to 2D)
        "wts": wts,
        "pvec": pvec,
    }


# ---------------------------------- main ------------------------------------ #

if __name__ == "__main__":
    NUM_LAYER = 2
    VOCAB = 50
    EMB_DIM = 32          # subtoken_emb_dim == node_attr_dim == node_rep_dim (gin)
    NUM_EDGE_TYPE = 4     # synthetic stand-in for len(tokens/edge_type.json)
    N_NODES = 16
    SEQ = 6               # sub-tokens per node
    N_EDGES = 24

    key = jax.random.PRNGKey(0)
    k_par, k_tok, k_src, k_dst, k_ea = jax.random.split(key, 5)

    params = init_params(k_par, VOCAB, EMB_DIM, NUM_LAYER, NUM_EDGE_TYPE)

    tokens = jax.random.randint(k_tok, (N_NODES, SEQ), 0, VOCAB, dtype=jnp.int32)
    src = jax.random.randint(k_src, (N_EDGES,), 0, N_NODES, dtype=jnp.int32)
    dst = jax.random.randint(k_dst, (N_EDGES,), 0, N_NODES, dtype=jnp.int32)
    edge_index = jnp.stack([src, dst], axis=0)
    edge_attr = jax.random.randint(k_ea, (N_EDGES,), 0, NUM_EDGE_TYPE, dtype=jnp.int32)

    node_rep, x_emb = jax.jit(gnn_forward)(tokens, edge_index, edge_attr, params)
    jax.block_until_ready((node_rep, x_emb))

    assert node_rep.shape == (N_NODES, EMB_DIM)
    assert x_emb.shape == (N_NODES, EMB_DIM)
    assert bool(jnp.all(jnp.isfinite(node_rep))) and bool(jnp.all(jnp.isfinite(x_emb)))
    print("KERNEL_OK")
</pallas_src>

<mosaic_0001>
module attributes {stable_mosaic.version = 11 : i64} {
  func.func @_gnn_fused_kernel(%arg0: memref<16x8x32xf32, #tpu.memory_space<vmem>>, %arg1: memref<16x8x1xf32, #tpu.memory_space<vmem>>, %arg2: memref<16x128xbf16, #tpu.memory_space<vmem>>, %arg3: memref<128x16xbf16, #tpu.memory_space<vmem>>, %arg4: memref<128x32xf32, #tpu.memory_space<vmem>>, %arg5: memref<2x96x64xf32, #tpu.memory_space<vmem>>, %arg6: memref<2x4x64xf32, #tpu.memory_space<vmem>>, %arg7: memref<2x16x32xf32, #tpu.memory_space<vmem>>) attributes {dimension_semantics = [], scalar_prefetch = 0 : i64, scratch_operands = 0 : i64, tpu.core_type = #tpu.core_type<tc>} {
    %c0 = arith.constant 0 : index
    %c0_0 = arith.constant 0 : index
    %c0_1 = arith.constant 0 : index
    %0 = vector.load %arg0[%c0, %c0_0, %c0_1] : memref<16x8x32xf32, #tpu.memory_space<vmem>>, vector<16x8x32xf32>
    %c0_2 = arith.constant 0 : index
    %c0_3 = arith.constant 0 : index
    %c0_4 = arith.constant 0 : index
    %1 = vector.load %arg1[%c0_2, %c0_3, %c0_4] : memref<16x8x1xf32, #tpu.memory_space<vmem>>, vector<16x8x1xf32>
    %2 = vector.broadcast %1 : vector<16x8x1xf32> to vector<16x8x32xf32>
    %3 = arith.mulf %0, %2 : vector<16x8x32xf32>
    %cst = arith.constant dense<0.000000e+00> : vector<16x32xf32>
    %4 = vector.multi_reduction <add>, %3, %cst [1] : vector<16x8x32xf32> to vector<16x32xf32>
    %c0_5 = arith.constant 0 : index
    %c0_6 = arith.constant 0 : index
    %5 = vector.load %arg2[%c0_5, %c0_6] : memref<16x128xbf16, #tpu.memory_space<vmem>>, vector<16x128xbf16>
    %c0_7 = arith.constant 0 : index
    %c0_8 = arith.constant 0 : index
    %6 = vector.load %arg3[%c0_7, %c0_8] : memref<128x16xbf16, #tpu.memory_space<vmem>>, vector<128x16xbf16>
    %cst_9 = arith.constant dense<0.000000e+00> : vector<16x16xf32>
    %7 = tpu.matmul %5, %6, %cst_9 {dimension_numbers = #tpu.dot_dimension_numbers<[1], [0], [0], [1], [0, 0, 1, 1], [], []>} : vector<16x128xbf16>, vector<128x16xbf16>, vector<16x16xf32> -> vector<16x16xf32>
    %8 = tpu.iota {dimensions = array<i32: 0>} : vector<16x16xi32>
    %9 = tpu.iota {dimensions = array<i32: 1>} : vector<16x16xi32>
    %10 = arith.cmpi eq, %8, %9 : vector<16x16xi32>
    %11 = arith.extui %10 : vector<16x16xi1> to vector<16x16xi32>
    %12 = arith.sitofp %11 : vector<16x16xi32> to vector<16x16xf32>
    %13 = arith.addf %7, %12 : vector<16x16xf32>
    %c0_10 = arith.constant 0 : index
    %c0_11 = arith.constant 0 : index
    %14 = vector.load %arg2[%c0_10, %c0_11] : memref<16x128xbf16, #tpu.memory_space<vmem>>, vector<16x128xbf16>
    %15 = arith.extf %14 : vector<16x128xbf16> to vector<16x128xf32>
    %c0_12 = arith.constant 0 : index
    %c0_13 = arith.constant 0 : index
    %16 = vector.load %arg4[%c0_12, %c0_13] : memref<128x32xf32, #tpu.memory_space<vmem>>, vector<128x32xf32>
    %cst_14 = arith.constant dense<0.000000e+00> : vector<16x32xf32>
    %17 = tpu.matmul %15, %16, %cst_14 {dimension_numbers = #tpu.dot_dimension_numbers<[1], [0], [0], [1], [0, 0, 1, 1], [], []>} : vector<16x128xf32>, vector<128x32xf32>, vector<16x32xf32> -> vector<16x32xf32>
    %c0_15 = arith.constant 0 : index
    %c0_16 = arith.constant 0 : index
    %c0_17 = arith.constant 0 : index
    %18 = vector.load %arg5[%c0_15, %c0_16, %c0_17] : memref<2x96x64xf32, #tpu.memory_space<vmem>>, vector<1x32x64xf32>
    %19 = vector.shape_cast %18 : vector<1x32x64xf32> to vector<32x64xf32>
    %c0_18 = arith.constant 0 : index
    %c32 = arith.constant 32 : index
    %c0_19 = arith.constant 0 : index
    %20 = vector.load %arg5[%c0_18, %c32, %c0_19] : memref<2x96x64xf32, #tpu.memory_space<vmem>>, vector<1x64x32xf32>
    %21 = vector.shape_cast %20 : vector<1x64x32xf32> to vector<64x32xf32>
    %c0_20 = arith.constant 0 : index
    %c0_21 = arith.constant 0 : index
    %c0_22 = arith.constant 0 : index
    %22 = vector.load %arg6[%c0_20, %c0_21, %c0_22] : memref<2x4x64xf32, #tpu.memory_space<vmem>>, vector<1x1x64xf32>
    %23 = vector.shape_cast %22 : vector<1x1x64xf32> to vector<1x64xf32>
    %c0_23 = arith.constant 0 : index
    %c1 = arith.constant 1 : index
    %c0_24 = arith.constant 0 : index
    %24 = vector.load %arg6[%c0_23, %c1, %c0_24] : memref<2x4x64xf32, #tpu.memory_space<vmem>>, vector<1x1x32xf32>
    %25 = vector.shape_cast %24 : vector<1x1x32xf32> to vector<1x32xf32>
    %c0_25 = arith.constant 0 : index
    %c2 = arith.constant 2 : index
    %c0_26 = arith.constant 0 : index
    %26 = vector.load %arg6[%c0_25, %c2, %c0_26] : memref<2x4x64xf32, #tpu.memory_space<vmem>>, vector<1x1x32xf32>
    %27 = vector.shape_cast %26 : vector<1x1x32xf32> to vector<1x32xf32>
    %c0_27 = arith.constant 0 : index
    %c3 = arith.constant 3 : index
    %c0_28 = arith.constant 0 : index
    %28 = vector.load %arg6[%c0_27, %c3, %c0_28] : memref<2x4x64xf32, #tpu.memory_space<vmem>>, vector<1x1x32xf32>
    %29 = vector.shape_cast %28 : vector<1x1x32xf32> to vector<1x32xf32>
    %cst_29 = arith.constant dense<0.000000e+00> : vector<16x32xf32>
    %30 = tpu.matmul %13, %4, %cst_29 {dimension_numbers = #tpu.dot_dimension_numbers<[1], [0], [0], [1], [0, 0, 1, 1], [], []>} : vector<16x16xf32>, vector<16x32xf32>, vector<16x32xf32> -> vector<16x32xf32>
    %31 = arith.addf %30, %17 : vector<16x32xf32>
    %cst_30 = arith.constant dense<0.000000e+00> : vector<16x64xf32>
    %32 = tpu.matmul %31, %19, %cst_30 {dimension_numbers = #tpu.dot_dimension_numbers<[1], [0], [0], [1], [0, 0, 1, 1], [], []>} : vector<16x32xf32>, vector<32x64xf32>, vector<16x64xf32> -> vector<16x64xf32>
    %33 = vector.broadcast %23 : vector<1x64xf32> to vector<16x64xf32>
    %34 = arith.addf %32, %33 : vector<16x64xf32>
    %cst_31 = arith.constant 0.000000e+00 : f32
    %35 = vector.broadcast %cst_31 : f32 to vector<16x64xf32>
    %36 = arith.maximumf %34, %35 : vector<16x64xf32>
    %cst_32 = arith.constant dense<0.000000e+00> : vector<16x32xf32>
    %37 = tpu.matmul %36, %21, %cst_32 {dimension_numbers = #tpu.dot_dimension_numbers<[1], [0], [0], [1], [0, 0, 1, 1], [], []>} : vector<16x64xf32>, vector<64x32xf32>, vector<16x32xf32> -> vector<16x32xf32>
    %38 = vector.broadcast %25 : vector<1x32xf32> to vector<16x32xf32>
    %39 = arith.addf %37, %38 : vector<16x32xf32>
    %cst_33 = arith.constant dense<0.000000e+00> : vector<32xf32>
    %40 = vector.multi_reduction <add>, %39, %cst_33 [0] : vector<16x32xf32> to vector<32xf32>
    %41 = vector.shape_cast %40 : vector<32xf32> to vector<1x32xf32>
    %cst_34 = arith.constant 6.250000e-02 : f32
    %42 = vector.broadcast %cst_34 : f32 to vector<1x32xf32>
    %43 = arith.mulf %41, %42 : vector<1x32xf32>
    %44 = vector.broadcast %43 : vector<1x32xf32> to vector<16x32xf32>
    %45 = arith.subf %39, %44 : vector<16x32xf32>
    %46 = arith.mulf %45, %45 : vector<16x32xf32>
    %cst_35 = arith.constant dense<0.000000e+00> : vector<32xf32>
    %47 = vector.multi_reduction <add>, %46, %cst_35 [0] : vector<16x32xf32> to vector<32xf32>
    %48 = vector.shape_cast %47 : vector<32xf32> to vector<1x32xf32>
    %cst_36 = arith.constant 6.250000e-02 : f32
    %49 = vector.broadcast %cst_36 : f32 to vector<1x32xf32>
    %50 = arith.mulf %48, %49 : vector<1x32xf32>
    %cst_37 = arith.constant 9.99999974E-6 : f32
    %51 = vector.broadcast %cst_37 : f32 to vector<1x32xf32>
    %52 = arith.addf %50, %51 : vector<1x32xf32>
    %53 = math.rsqrt %52 : vector<1x32xf32>
    %54 = vector.broadcast %53 : vector<1x32xf32> to vector<16x32xf32>
    %55 = arith.mulf %45, %54 : vector<16x32xf32>
    %56 = vector.broadcast %27 : vector<1x32xf32> to vector<16x32xf32>
    %57 = arith.mulf %55, %56 : vector<16x32xf32>
    %58 = vector.broadcast %29 : vector<1x32xf32> to vector<16x32xf32>
    %59 = arith.addf %57, %58 : vector<16x32xf32>
    %cst_38 = arith.constant 0.000000e+00 : f32
    %60 = vector.broadcast %cst_38 : f32 to vector<16x32xf32>
    %61 = arith.maximumf %59, %60 : vector<16x32xf32>
    %c1_39 = arith.constant 1 : index
    %c0_40 = arith.constant 0 : index
    %c0_41 = arith.constant 0 : index
    %62 = vector.load %arg5[%c1_39, %c0_40, %c0_41] : memref<2x96x64xf32, #tpu.memory_space<vmem>>, vector<1x32x64xf32>
    %63 = vector.shape_cast %62 : vector<1x32x64xf32> to vector<32x64xf32>
    %c1_42 = arith.constant 1 : index
    %c32_43 = arith.constant 32 : index
    %c0_44 = arith.constant 0 : index
    %64 = vector.load %arg5[%c1_42, %c32_43, %c0_44] : memref<2x96x64xf32, #tpu.memory_space<vmem>>, vector<1x64x32xf32>
    %65 = vector.shape_cast %64 : vector<1x64x32xf32> to vector<64x32xf32>
    %c1_45 = arith.constant 1 : index
    %c0_46 = arith.constant 0 : index
    %c0_47 = arith.constant 0 : index
    %66 = vector.load %arg6[%c1_45, %c0_46, %c0_47] : memref<2x4x64xf32, #tpu.memory_space<vmem>>, vector<1x1x64xf32>
    %67 = vector.shape_cast %66 : vector<1x1x64xf32> to vector<1x64xf32>
    %c1_48 = arith.constant 1 : index
    %c1_49 = arith.constant 1 : index
    %c0_50 = arith.constant 0 : index
    %68 = vector.load %arg6[%c1_48, %c1_49, %c0_50] : memref<2x4x64xf32, #tpu.memory_space<vmem>>, vector<1x1x32xf32>
    %69 = vector.shape_cast %68 : vector<1x1x32xf32> to vector<1x32xf32>
    %c1_51 = arith.constant 1 : index
    %c2_52 = arith.constant 2 : index
    %c0_53 = arith.constant 0 : index
    %70 = vector.load %arg6[%c1_51, %c2_52, %c0_53] : memref<2x4x64xf32, #tpu.memory_space<vmem>>, vector<1x1x32xf32>
    %71 = vector.shape_cast %70 : vector<1x1x32xf32> to vector<1x32xf32>
    %c1_54 = arith.constant 1 : index
    %c3_55 = arith.constant 3 : index
    %c0_56 = arith.constant 0 : index
    %72 = vector.load %arg6[%c1_54, %c3_55, %c0_56] : memref<2x4x64xf32, #tpu.memory_space<vmem>>, vector<1x1x32xf32>
    %73 = vector.shape_cast %72 : vector<1x1x32xf32> to vector<1x32xf32>
    %cst_57 = arith.constant dense<0.000000e+00> : vector<16x32xf32>
    %74 = tpu.matmul %13, %61, %cst_57 {dimension_numbers = #tpu.dot_dimension_numbers<[1], [0], [0], [1], [0, 0, 1, 1], [], []>} : vector<16x16xf32>, vector<16x32xf32>, vector<16x32xf32> -> vector<16x32xf32>
    %75 = arith.addf %74, %17 : vector<16x32xf32>
    %cst_58 = arith.constant dense<0.000000e+00> : vector<16x64xf32>
    %76 = tpu.matmul %75, %63, %cst_58 {dimension_numbers = #tpu.dot_dimension_numbers<[1], [0], [0], [1], [0, 0, 1, 1], [], []>} : vector<16x32xf32>, vector<32x64xf32>, vector<16x64xf32> -> vector<16x64xf32>
    %77 = vector.broadcast %67 : vector<1x64xf32> to vector<16x64xf32>
    %78 = arith.addf %76, %77 : vector<16x64xf32>
    %cst_59 = arith.constant 0.000000e+00 : f32
    %79 = vector.broadcast %cst_59 : f32 to vector<16x64xf32>
    %80 = arith.maximumf %78, %79 : vector<16x64xf32>
    %cst_60 = arith.constant dense<0.000000e+00> : vector<16x32xf32>
    %81 = tpu.matmul %80, %65, %cst_60 {dimension_numbers = #tpu.dot_dimension_numbers<[1], [0], [0], [1], [0, 0, 1, 1], [], []>} : vector<16x64xf32>, vector<64x32xf32>, vector<16x32xf32> -> vector<16x32xf32>
    %82 = vector.broadcast %69 : vector<1x32xf32> to vector<16x32xf32>
    %83 = arith.addf %81, %82 : vector<16x32xf32>
    %cst_61 = arith.constant dense<0.000000e+00> : vector<32xf32>
    %84 = vector.multi_reduction <add>, %83, %cst_61 [0] : vector<16x32xf32> to vector<32xf32>
    %85 = vector.shape_cast %84 : vector<32xf32> to vector<1x32xf32>
    %cst_62 = arith.constant 6.250000e-02 : f32
    %86 = vector.broadcast %cst_62 : f32 to vector<1x32xf32>
    %87 = arith.mulf %85, %86 : vector<1x32xf32>
    %88 = vector.broadcast %87 : vector<1x32xf32> to vector<16x32xf32>
    %89 = arith.subf %83, %88 : vector<16x32xf32>
    %90 = arith.mulf %89, %89 : vector<16x32xf32>
    %cst_63 = arith.constant dense<0.000000e+00> : vector<32xf32>
    %91 = vector.multi_reduction <add>, %90, %cst_63 [0] : vector<16x32xf32> to vector<32xf32>
    %92 = vector.shape_cast %91 : vector<32xf32> to vector<1x32xf32>
    %cst_64 = arith.constant 6.250000e-02 : f32
    %93 = vector.broadcast %cst_64 : f32 to vector<1x32xf32>
    %94 = arith.mulf %92, %93 : vector<1x32xf32>
    %cst_65 = arith.constant 9.99999974E-6 : f32
    %95 = vector.broadcast %cst_65 : f32 to vector<1x32xf32>
    %96 = arith.addf %94, %95 : vector<1x32xf32>
    %97 = math.rsqrt %96 : vector<1x32xf32>
    %98 = vector.broadcast %97 : vector<1x32xf32> to vector<16x32xf32>
    %99 = arith.mulf %89, %98 : vector<16x32xf32>
    %100 = vector.broadcast %71 : vector<1x32xf32> to vector<16x32xf32>
    %101 = arith.mulf %99, %100 : vector<16x32xf32>
    %102 = vector.broadcast %73 : vector<1x32xf32> to vector<16x32xf32>
    %103 = arith.addf %101, %102 : vector<16x32xf32>
    %c0_66 = arith.constant 0 : index
    %c0_67 = arith.constant 0 : index
    %c0_68 = arith.constant 0 : index
    %104 = vector.load %arg7[%c0_66, %c0_67, %c0_68] : memref<2x16x32xf32, #tpu.memory_space<vmem>>, vector<1x16x32xf32>
    %105 = vector.shape_cast %104 : vector<1x16x32xf32> to vector<16x32xf32>
    %106 = vector.shape_cast %103 : vector<16x32xf32> to vector<1x16x32xf32>
    tpu.vector_store %arg7[%c0_66, %c0_67, %c0_68], %106 {strides = array<i32>} : memref<2x16x32xf32, #tpu.memory_space<vmem>>, vector<1x16x32xf32>,
    %c1_69 = arith.constant 1 : index
    %c0_70 = arith.constant 0 : index
    %c0_71 = arith.constant 0 : index
    %107 = vector.load %arg7[%c1_69, %c0_70, %c0_71] : memref<2x16x32xf32, #tpu.memory_space<vmem>>, vector<1x16x32xf32>
    %108 = vector.shape_cast %107 : vector<1x16x32xf32> to vector<16x32xf32>
    %109 = vector.shape_cast %4 : vector<16x32xf32> to vector<1x16x32xf32>
    tpu.vector_store %arg7[%c1_69, %c0_70, %c0_71], %109 {strides = array<i32>} : memref<2x16x32xf32, #tpu.memory_space<vmem>>, vector<1x16x32xf32>,
    return
  }
}

</mosaic_0001>

<bundles_post_ra>
// kernel: gnn_forward.1
= control target key start
LH: loop header
LB: loop body
LE: loop exit
PB: predicated region body
PF: predicated region fallthrough
CT: control target
= control target key end

     0   :  { %v847_v0 = vmov 0   ;;  %vm154_vm0 = vcmask 261120   ;;  %vm437_vm1 = vcmask 1041409   ;;  %vm439_vm2 = vcmask 1042434   ;;  %s1256_s1 = inlined_call_operand.vmem [shape: f32[16,8,1], index: 1, kind: input, shape index: {}]   ;;  %s1257_s3 = inlined_call_operand.vmem [shape: bf16[128,16], index: 3, kind: input, shape index: {}]   ;;  %s1258_s2 = inlined_call_operand.vmem [shape: bf16[16,128], index: 2, kind: input, shape index: {}]   ;;  %s1259_s0 = inlined_call_operand.vmem [shape: f32[16,8,32], index: 0, kind: input, shape index: {}]   ;;  %s1260_s4 = inlined_call_operand.vmem [shape: f32[128,32], index: 4, kind: input, shape index: {}]   ;;  %s1261_s5 = inlined_call_operand.vmem [shape: f32[2,96,64], index: 5, kind: input, shape index: {}]   ;;  %s1262_s7 = inlined_call_operand.vmem [shape: f32[2,16,32], index: 7, kind: output, shape index: {}]   ;;  %s1263_s6 = inlined_call_operand.vmem [shape: f32[2,4,64], index: 6, kind: input, shape index: {}]  }
   0x1   :  { %834 = vset.pattern.permute.xlu2 %v847_v0  ;;  %833 = vset.pattern.permute.xlu1 %v847_v0  ;;  %v52_v1 = vld [vmem:[%s1256_s1 + $0x50] sm:$0xff]  ;;  %v50_v2 = vld [vmem:[%s1256_s1 + $0x40] sm:$0xff]  ;;  %v43_v3 = vld [vmem:[%s1256_s1 + $0x8] sm:$0xff]  ;;  %vm441_vm3 = vcmask 1043459   ;;  %vm443_vm4 = vcmask 1044484   ;;  %vm445_vm5 = vcmask 1045509  }
   0x2   :  { %832 = vset.pattern.permute.xlu0 %v847_v0  ;;  %110 = vperm.xlu1 %833, %v52_v1   ;;  %v829_v4 = vld [vmem:[%s1257_s3 + $0x38] sm:$0xff]  ;;  %v828_v5 = vld [vmem:[%s1257_s3 + $0x30] sm:$0xff]  ;;  %v42_v6 = vld [vmem:[%s1256_s1] sm:$0xff]  ;;  %vm447_vm6 = vcmask 1046534   ;;  %vm449_vm7 = vcmask 1047559   ;;  %vm460_vm9 = vcmask 130048  }
   0x3   :  { %100 = vperm.xlu0 %832, %v50_v2   ;;  %65 = vperm.xlu2 %834, %v43_v3   ;;  %v51_v7 = vld [vmem:[%s1256_s1 + $0x48] sm:$0xff]  ;;  %v53_v8 = vld [vmem:[%s1256_s1 + $0x58] sm:$0xff]  ;;  %v826_v10 = vld [vmem:[%s1257_s3 + $0x20] sm:$0xff]  ;;  %vm523_vm11 = vcmask 523264  }
   0x4   :  { %350 = vmatpush.bf16.msra.mxu0 %v829_v4  ;;  %v827_v9 = vld [vmem:[%s1257_s3 + $0x28] sm:$0xff]  ;;  %v54_v11 = vld [vmem:[%s1256_s1 + $0x60] sm:$0xff]  ;;  %v44_v12 = vld [vmem:[%s1256_s1 + $0x10] sm:$0xff] }
   0x5   :  { %v45_v13 = vld [vmem:[%s1256_s1 + $0x18] sm:$0xff]  ;;  %v824_v15 = vld [vmem:[%s1257_s3 + $0x10] sm:$0xff]  ;;  %v46_v16 = vld [vmem:[%s1256_s1 + $0x20] sm:$0xff] }
   0x6   :  { %v825_v14 = vld [vmem:[%s1257_s3 + $0x18] sm:$0xff]  ;;  %v55_v17 = vld [vmem:[%s1256_s1 + $0x68] sm:$0xff]  ;;  %v56_v18 = vld [vmem:[%s1256_s1 + $0x70] sm:$0xff] }
   0x7   :  { %v823_v19 = vld [vmem:[%s1257_s3 + $0x8] sm:$0xff]  ;;  %v822_v20 = vld [vmem:[%s1257_s3] sm:$0xff]  ;;  %v57_v21 = vld [vmem:[%s1256_s1 + $0x78] sm:$0xff] }
   0x8   :  { %351 = vmatpush.bf16.msra.mxu0 %v828_v5  ;;  %v47_v22 = vld [vmem:[%s1256_s1 + $0x28] sm:$0xff]  ;;  %v48_v23 = vld [vmem:[%s1256_s1 + $0x30] sm:$0xff]  ;;  %v821_v24 = vld [vmem:[%s1258_s2] sm:$0xff] }
   0x9   :  { %v49_v25 = vld [vmem:[%s1256_s1 + $0x38] sm:$0xff]  ;;  %v27_v28 = vld [vmem:[%s1259_s0 + $0x8] sm:$0xff]  ;;  %v36_v36 = vld [vmem:[%s1259_s0 + $0x50] sm:$0xff] }
   0xa   :  { %60 = vperm.xlu1 %833, %v42_v6   ;;  %v37_v33 = vld [vmem:[%s1259_s0 + $0x58] sm:$0xff]  ;;  %v380_v37 = vld [vmem:[%s1260_s4 + $0x70] sm:$0xff]  ;;  %v34_v40 = vld [vmem:[%s1259_s0 + $0x40] sm:$0xff] }
   0xb   :  { %105 = vperm.xlu0 %832, %v51_v7   ;;  %115 = vperm.xlu2 %834, %v53_v8   ;;  %v381_v35 = vld [vmem:[%s1260_s4 + $0x78] sm:$0xff]  ;;  %v379_v41 = vld [vmem:[%s1260_s4 + $0x68] sm:$0xff]  ;;  %v40_v45 = vld [vmem:[%s1259_s0 + $0x70] sm:$0xff] }
   0xc   :  { %352 = vmatpush.bf16.msra.mxu0 %v827_v9  ;;  %382 = vmatpush.msra.mxu1 %v381_v35  ;;  %v35_v46 = vld [vmem:[%s1259_s0 + $0x48] sm:$0xff]  ;;  %v378_v47 = vld [vmem:[%s1260_s4 + $0x60] sm:$0xff]  ;;  %v377_v52 = vld [vmem:[%s1260_s4 + $0x58] sm:$0xff] }
   0xd   :  { %v29_v53 = vld [vmem:[%s1259_s0 + $0x18] sm:$0xff]  ;;  %v376_v59 = vld [vmem:[%s1260_s4 + $0x50] sm:$0xff]  ;;  %v26_v62 = vld [vmem:[%s1259_s0] sm:$0xff] }
   0xe   :  { %383 = vmatpush.msra.mxu1 %v380_v37  ;;  %v375_v2 = vld [vmem:[%s1260_s4 + $0x48] sm:$0xff]  ;;  %v38_v5 = vld [vmem:[%s1259_s0 + $0x60] sm:$0xff]  ;;  %v28_v8 = vld [vmem:[%s1259_s0 + $0x10] sm:$0xff] }
   0xf   :  { %v374_v9 = vld [vmem:[%s1260_s4 + $0x40] sm:$0xff] }
  0x10   :  { %353 = vmatpush.bf16.msra.mxu0 %v826_v10  ;;  %384 = vmatpush.msra.mxu1 %v379_v41  ;;  %v30_v35 = vld [vmem:[%s1259_s0 + $0x20] sm:$0xff] }
  0x12   :  { %120 = vperm.xlu1 %833, %v54_v11   ;;  %385 = vmatpush.msra.mxu1 %v378_v47 }
  0x13   :  { %70 = vperm.xlu0 %832, %v44_v12   ;;  %75 = vperm.xlu2 %834, %v45_v13  }
  0x14   :  { %354 = vmatpush.bf16.msra.mxu0 %v825_v14  ;;  %386 = vmatpush.msra.mxu1 %v377_v52 }
  0x16   :  { %387 = vmatpush.msra.mxu1 %v376_v59 }
  0x18   :  { %355 = vmatpush.bf16.msra.mxu0 %v824_v15  ;;  %388 = vmatpush.msra.mxu1 %v375_v2  ;;  %v1065_v2 = vld [vmem:[%s1258_s2] sm:$0xff]  }
  0x1a   :  { %80 = vperm.xlu1 %833, %v46_v16   ;;  %389 = vmatpush.msra.mxu1 %v374_v9 }
  0x1b   :  { %125 = vperm.xlu0 %832, %v55_v17   ;;  %130 = vperm.xlu2 %834, %v56_v18   ;;  %v373_v18 = vld [vmem:[%s1260_s4 + $0x38] sm:$0xff] }
  0x1c   :  { %356 = vmatpush.bf16.msra.mxu0 %v823_v19  ;;  %390 = vmatpush.msra.mxu1 %v373_v18 }
  0x20   :  { %357 = vmatpush.bf16.msra.mxu0 %v822_v20 }
  0x22   :  { %135 = vperm.xlu1 %833, %v57_v21  }
  0x23   :  { %85 = vperm.xlu0 %832, %v47_v22   ;;  %90 = vperm.xlu2 %834, %v48_v23  }
  0x24   :  { %358 = vmatmul.bf16.vlgmr.msra.gmra.mxu0 %v821_v24  ;;  %v372_v24 = vld [vmem:[%s1260_s4 + $0x30] sm:$0xff] }
  0x25   :  { %391 = vmatpush.msra.mxu1 %v372_v24 }
  0x2b   :  { %95 = vperm.xlu0 %832, %v49_v25   ;;  %v371_v25 = vld [vmem:[%s1260_s4 + $0x28] sm:$0xff] }
  0x2c   :  { %392 = vmatpush.msra.mxu1 %v371_v25 }
  0x5d   :  { %v66_v26 = vpop.permute.xlu2 %65 }
  0x5e   :  { %v139_v29 = vmul.f32 %v66_v26, %v27_v28 }
  0x60   :  { %v162_v32 = vsel %vm154_vm0, %v139_v29, 0.0 }
  0x61   :  { %v163_v38 = vrot.slane %v162_v32, 4 }
  0x63   :  { %v164_v48 = vadd.f32 %v163_v38, %v162_v32 }
  0x65   :  { %v116_v27 = vpop.permute.xlu2 %115  ;;  %v165_v60 = vrot.slane %v164_v48, 2 }
  0x66   :  { %v149_v39 = vmul.f32 %v116_v27, %v37_v33 }
  0x67   :  { %v166_v10 = vadd.f32 %v165_v60, %v164_v48  ;;  %v368_v60 = vld [vmem:[%s1260_s4 + $0x10] sm:$0xff] }
  0x68   :  { %v232_v49 = vsel %vm154_vm0, %v149_v39, 0.0  ;;  %v32_v39 = vld [vmem:[%s1259_s0 + $0x30] sm:$0xff] }
  0x69   :  { %v233_v57 = vrot.slane %v232_v49, 4 }
  0x6b   :  { %v234_v6 = vadd.f32 %v233_v57, %v232_v49 }
  0x6d   :  { %v76_v30 = vpop.permute.xlu2 %75  ;;  %v235_v21 = vrot.slane %v234_v6, 2 }
  0x6e   :  { %v141_v63 = vmul.f32 %v76_v30, %v29_v53  ;;  %v167_v30 = vrot.slane %v166_v10, 1 }
  0x6f   :  { %v236_v37 = vadd.f32 %v235_v21, %v234_v6  ;;  %v364_v6 = vunpack.c.l.bf16 %v1065_v2 }
  0x70   :  { %v176_v13 = vsel %vm154_vm0, %v141_v63, 0.0  ;;  %v1052_v47 = vadd.f32 %v167_v30, %v166_v10 }
  0x71   :  { %v177_v26 = vrot.slane %v176_v13, 4 }
  0x74   :  { %v111_v31 = vpop.permute.xlu1 %110 }
  0x75   :  { %v101_v34 = vpop.permute.xlu0 %100  ;;  %v148_v42 = vmul.f32 %v111_v31, %v36_v36  ;;  %v131_v44 = vpop.permute.xlu2 %130  ;;  %v370_v36 = vld [vmem:[%s1260_s4 + $0x20] sm:$0xff] }
  0x76   :  { %v146_v43 = vmul.f32 %v101_v34, %v34_v40  ;;  %v152_v55 = vmul.f32 %v131_v44, %v40_v45  ;;  %v178_v44 = vadd.f32 %v177_v26, %v176_v13  ;;  %393 = vmatpush.msra.mxu1 %v370_v36 }
  0x77   :  { %v225_v54 = vsel %vm154_vm0, %v148_v42, 0.0  ;;  %v39_v42 = vld [vmem:[%s1259_s0 + $0x68] sm:$0xff] }
  0x78   :  { %v211_v58 = vsel %vm154_vm0, %v146_v43, 0.0  ;;  %v226_v0 = vrot.slane %v225_v54, 4  ;;  %v253_v4 = vsel %vm154_vm0, %v152_v55, 0.0  ;;  %v369_v43 = vld [vmem:[%s1260_s4 + $0x18] sm:$0xff] }
  0x79   :  { %v212_v3 = vrot.slane %v211_v58, 4  ;;  %v254_v15 = vrot.slane %v253_v4, 4  ;;  %394 = vmatpush.msra.mxu1 %v369_v43  ;;  %v365_v43 = vunpack.c.h.bf16 %v1065_v2 }
  0x7a   :  { %v227_v14 = vadd.f32 %v226_v0, %v225_v54 }
  0x7b   :  { %v213_v19 = vadd.f32 %v212_v3, %v211_v58  ;;  %v255_v32 = vadd.f32 %v254_v15, %v253_v4  ;;  %395 = vmatpush.msra.mxu1 %v368_v60  ;;  %v31_v15 = vld [vmem:[%s1259_s0 + $0x28] sm:$0xff] }
  0x7c   :  { %v61_v50 = vpop.permute.xlu1 %60  ;;  %v228_v31 = vrot.slane %v227_v14, 2 }
  0x7d   :  { %v106_v51 = vpop.permute.xlu0 %105  ;;  %v138_v7 = vmul.f32 %v61_v50, %v26_v62  ;;  %v214_v33 = vrot.slane %v213_v19, 2  ;;  %v91_v38 = vpop.permute.xlu2 %90  ;;  %v256_v49 = vrot.slane %v255_v32, 2  ;;  %v179_v62 = vrot.slane %v178_v44, 2 }
  0x7e   :  { %v147_v56 = vmul.f32 %v106_v51, %v35_v46  ;;  %v229_v48 = vadd.f32 %v228_v31, %v227_v14  ;;  %v144_v53 = vmul.f32 %v91_v38, %v32_v39 }
  0x7f   :  { %v155_v22 = vsel %vm154_vm0, %v138_v7, 0.0  ;;  %v215_v52 = vadd.f32 %v214_v33, %v213_v19  ;;  %v1067_v3 = vadd.f32 %v256_v49, %v255_v32 }
  0x80   :  { %v218_v61 = vsel %vm154_vm0, %v147_v56, 0.0  ;;  %v156_v34 = vrot.slane %v155_v22, 4  ;;  %v237_v56 = vrot.slane %v236_v37, 1  ;;  %v230_v7 = vrot.slane %v229_v48, 1 }
  0x81   :  { %v219_v1 = vrot.slane %v218_v61, 4  ;;  %v197_v9 = vsel %vm154_vm0, %v144_v53, 0.0  ;;  %v258_v21 = vrot.slane %v1067_v3, 1 }
  0x82   :  { %v157_v54 = vadd.f32 %v156_v34, %v155_v22  ;;  %v198_v22 = vrot.slane %v197_v9, 4  ;;  %v231_v26 = vadd.f32 %v230_v7, %v229_v48  ;;  %v408_v34 = vld [vmem:[%s1261_s5 + $0x18] sm:$0xff] }
  0x83   :  { %v220_v11 = vadd.f32 %v219_v1, %v218_v61  ;;  %v367_v61 = vld [vmem:[%s1260_s4 + $0x8] sm:$0xff]  ;;  %509 = vmatpush.msra.mxu3 %v408_v34 }
  0x84   :  { %v121_v12 = vpop.permute.xlu1 %120  ;;  %v158_v10 = vrot.slane %v157_v54, 2  ;;  %396 = vmatpush.msra.mxu1 %v367_v61 }
  0x85   :  { %v71_v16 = vpop.permute.xlu0 %70  ;;  %v150_v17 = vmul.f32 %v121_v12, %v38_v5  ;;  %v221_v27 = vrot.slane %v220_v11, 2  ;;  %v366_v5 = vld [vmem:[%s1260_s4] sm:$0xff] }
  0x86   :  { %v140_v20 = vmul.f32 %v71_v16, %v28_v8  ;;  %v216_v8 = vrot.slane %v215_v52, 1  ;;  %v238_v16 = vadd.f32 %v237_v56, %v236_v37  ;;  %397 = vmatpush.msra.mxu1 %v366_v5 }
  0x87   :  { %v239_v23 = vsel %vm154_vm0, %v150_v17, 0.0  ;;  %v222_v45 = vadd.f32 %v221_v27, %v220_v11  ;;  %v41_v11 = vld [vmem:[%s1259_s0 + $0x78] sm:$0xff]  ;;  %v1080_v17 = vadd.f32 %v179_v62, %v178_v44  ;;  %398 = vmatmul.f32.vlgmr.msra.gmra.mxu1 %v364_v6  ;;  %v285_v62 = vlaneseq }
  0x88   :  { %v169_v28 = vsel %vm154_vm0, %v140_v20, 0.0  ;;  %v240_v29 = vrot.slane %v239_v23, 4  ;;  %v217_v27 = vadd.f32 %v216_v8, %v215_v52 }
  0x89   :  { %v170_v40 = vrot.slane %v169_v28, 4  ;;  %v223_v63 = vrot.slane %v222_v45, 1  ;;  %v181_v44 = vrot.slane %v1080_v17, 1 }
  0x8a   :  { %v241_v41 = vadd.f32 %v240_v29, %v239_v23 }
  0x8b   :  { %v171_v57 = vadd.f32 %v170_v40, %v169_v28  ;;  %v224_v18 = vadd.f32 %v223_v63, %v222_v45  ;;  %v159_v28 = vadd.f32 %v158_v10, %v157_v54  ;;  %v199_v40 = vadd.f32 %v198_v22, %v197_v9 }
  0x8c   :  { %v81_v46 = vpop.permute.xlu1 %80  ;;  %v242_v58 = vrot.slane %v241_v41, 2  ;;  %v289_v10 = vand.u32 127, %v285_v62 }
  0x8d   :  { %v126_v50 = vpop.permute.xlu0 %125  ;;  %v142_v51 = vmul.f32 %v81_v46, %v30_v35  ;;  %v172_v12 = vrot.slane %v171_v57, 2  ;;  %v407_v35 = vld [vmem:[%s1261_s5 + $0x10] sm:$0xff]  ;;  %v451_v36 = vsel %vm437_vm1, %v224_v18, %v217_v27  ;;  %v160_v45 = vrot.slane %v159_v28, 1 }
  0x8e   :  { %v151_v55 = vmul.f32 %v126_v50, %v39_v42  ;;  %v243_v13 = vadd.f32 %v242_v58, %v241_v41  ;;  %510 = vmatpush.msra.mxu3 %v407_v35  ;;  %v452_v52 = vsel %vm439_vm2, %v231_v26, %v451_v36  ;;  %v200_v56 = vrot.slane %v199_v40, 2 }
  0x8f   :  { %v183_v59 = vsel %vm154_vm0, %v142_v51, 0.0  ;;  %v173_v30 = vadd.f32 %v172_v12, %v171_v57  ;;  %v33_v51 = vld [vmem:[%s1259_s0 + $0x38] sm:$0xff]  ;;  %401 = vmatmul.f32.gmra.mxu1 %v365_v43  ;;  %v453_v63 = vsel %vm441_vm3, %v238_v16, %v452_v52  ;;  %v182_v18 = vadd.f32 %v181_v44, %v1080_v17  ;;  %v415_v43 = vld [vmem:[%s1261_s5 + $0x50] sm:$0xff]  ;;  %v414_v44 = vld [vmem:[%s1261_s5 + $0x48] sm:$0xff] }
  0x90   :  { %v246_v0 = vsel %vm154_vm0, %v151_v55, 0.0  ;;  %v184_v1 = vrot.slane %v183_v59, 4  ;;  %v244_v31 = vrot.slane %v243_v13, 1  ;;  %v848_v26 = vmov 0.0  }
  0x91   :  { %v247_v4 = vrot.slane %v246_v0, 4  ;;  %v174_v48 = vrot.slane %v173_v30, 1 }
  0x92   :  { %v185_v19 = vadd.f32 %v184_v1, %v183_v59  ;;  %v245_v49 = vadd.f32 %v244_v31, %v243_v13  ;;  %v259_v59 = vadd.f32 %v258_v21, %v1067_v3 }
  0x93   :  { %v248_v14 = vadd.f32 %v247_v4, %v246_v0  ;;  %v161_v0 = vadd.f32 %v160_v45, %v159_v28  ;;  %v175_v1 = vadd.f32 %v174_v48, %v173_v30  ;;  %v413_v45 = vld [vmem:[%s1261_s5 + $0x40] sm:$0xff] }
  0x94   :  { %v136_v20 = vpop.permute.xlu1 %135  ;;  %v186_v37 = vrot.slane %v185_v19, 2  ;;  %v454_v4 = vsel %vm443_vm4, %v245_v49, %v453_v63 }
  0x95   :  { %v249_v23 = vrot.slane %v248_v14, 2  ;;  %v86_v24 = vpop.permute.xlu0 %85  ;;  %v153_v25 = vmul.f32 %v136_v20, %v41_v11  ;;  %v201_v11 = vadd.f32 %v200_v56, %v199_v40  ;;  %v438_v13 = vsel %vm437_vm1, %v1052_v47, %v161_v0  ;;  %v406_v40 = vld [vmem:[%s1261_s5 + $0x8] sm:$0xff]  ;;  %v409_v56 = vld [vmem:[%s1261_s5 + $0x20] sm:$0xff] }
  0x96   :  { %v143_v29 = vmul.f32 %v86_v24, %v31_v15  ;;  %v187_v54 = vadd.f32 %v186_v37, %v185_v19  ;;  %v286_v15 = vshrl.u32 %v285_v62, 7  ;;  %v440_v21 = vsel %vm439_vm2, %v175_v1, %v438_v13  ;;  %511 = vmatpush.msra.mxu3 %v406_v40  ;;  %v836_v1 = vld [vmem:[%s1263_s6 + $0x1] ss:$0 sm:$0xff] }
  0x97   :  { %v250_v32 = vadd.f32 %v249_v23, %v248_v14  ;;  %v260_v33 = vsel %vm154_vm0, %v153_v25, 0.0  ;;  %v202_v47 = vrot.slane %v201_v11, 1  ;;  %v442_v25 = vsel %vm441_vm3, %v182_v18, %v440_v21 }
  0x98   :  { %v190_v38 = vsel %vm154_vm0, %v143_v29, 0.0  ;;  %v261_v39 = vrot.slane %v260_v33, 4  ;;  %v188_v5 = vrot.slane %v187_v54, 1  ;;  %vm290_vm8 = vcmp.eq.s32.totalorder %v286_v15, %v289_v10 }
  0x99   :  { %v251_v41 = vrot.slane %v250_v32, 1  ;;  %v191_v42 = vrot.slane %v190_v38, 4  ;;  %v753_v17 = vsel %vm290_vm8, 1.0, %v848_v26  ;;  %v203_v31 = vadd.f32 %v202_v47, %v201_v11 }
  0x9a   :  { %v262_v46 = vadd.f32 %v261_v39, %v260_v33  ;;  %v189_v19 = vadd.f32 %v188_v5, %v187_v54  ;;  %v287_v33 = vadd.s32 8, %v286_v15  ;;  %v411_v54 = vld [vmem:[%s1261_s5 + $0x30] sm:$0xff] }
  0x9b   :  { %v192_v50 = vadd.f32 %v191_v42, %v190_v38  ;;  %v252_v53 = vadd.f32 %v251_v41, %v250_v32  ;;  %v405_v41 = vld [vmem:[%s1261_s5] sm:$0xff]  ;;  %v416_v42 = vld [vmem:[%s1261_s5 + $0x58] sm:$0xff] }
  0x9c   :  { %v263_v55 = vrot.slane %v262_v46, 2  ;;  %v444_v28 = vsel %vm443_vm4, %v189_v19, %v442_v25  ;;  %vm291_vm10 = vcmp.eq.s32.totalorder %v287_v33, %v289_v10  ;;  %512 = vmatpush.msra.mxu3 %v405_v41 }
  0x9d   :  { %v193_v57 = vrot.slane %v192_v50, 2  ;;  %v96_v58 = vpop.permute.xlu0 %95  ;;  %v455_v8 = vsel %vm445_vm5, %v252_v53, %v454_v4  ;;  %v754_v37 = vsel %vm291_vm10, 1.0, %v848_v26 }
  0x9e   :  { %v264_v60 = vadd.f32 %v263_v55, %v262_v46  ;;  %v145_v61 = vmul.f32 %v96_v58, %v33_v51  ;;  %v456_v16 = vsel %vm447_vm6, %v259_v59, %v455_v8  ;;  %v412_v46 = vld [vmem:[%s1261_s5 + $0x38] sm:$0xff]  ;;  %v410_v55 = vld [vmem:[%s1261_s5 + $0x28] sm:$0xff] }
  0x9f   :  { %v194_v2 = vadd.f32 %v193_v57, %v192_v50  ;;  %v835_v57 = vld [vmem:[%s1263_s6] ss:$0 sm:$0xff] }
  0xa0   :  { %v204_v6 = vsel %vm154_vm0, %v145_v61, 0.0  ;;  %v265_v7 = vrot.slane %v264_v60, 1 }
  0xa1   :  { %v195_v9 = vrot.slane %v194_v2, 1  ;;  %v205_v3 = vrot.slane %v204_v6, 4  ;;  %v359_v27 = vpop.f32.mrf.mxu0 }
  0xa2   :  { %v266_v12 = vadd.f32 %v265_v7, %v264_v60  ;;  %v1116_v32 = vadd.f32 %v753_v17, %v359_v27 }
  0xa3   :  { %v206_v14 = vadd.f32 %v205_v3, %v204_v6  ;;  %v196_v22 = vadd.f32 %v195_v9, %v194_v2 }
  0xa4   :  { %v457_v20 = vsel %vm449_vm7, %v266_v12, %v456_v16 }
  0xa5   :  { %v207_v23 = vrot.slane %v206_v14, 2  ;;  %481 = vmatpush.msra.mxu2 %v457_v20  ;;  %820 = vst.msk [vmem:[%s1262_s7 + $0x18] sm:$0xff] %vm154_vm0, %v457_v20  ;;  %v446_v30 = vsel %vm445_vm5, %v196_v22, %v444_v28 }
  0xa6   :  { %v448_v35 = vsel %vm447_vm6, %v203_v31, %v446_v30  ;;  %v799_v30 = vld [vmem:[%s1261_s5 + $0x70] sm:$0xff] }
  0xa7   :  { %v208_v24 = vadd.f32 %v207_v23, %v206_v14 }
  0xa9   :  { %v209_v29 = vrot.slane %v208_v24, 1  ;;  %v361_v38 = vpop.f32.mrf.mxu0 }
  0xaa   :  { %v1126_v39 = vadd.f32 %v754_v37, %v361_v38  ;;  %v837_v38 = vld [vmem:[%s1263_s6 + $0x2] ss:$0 sm:$0xff] }
  0xab   :  { %v210_v34 = vadd.f32 %v209_v29, %v208_v24  ;;  %v800_v29 = vld [vmem:[%s1261_s5 + $0x78] sm:$0xff] }
  0xad   :  { %v450_v36 = vsel %vm449_vm7, %v210_v34, %v448_v35 }
  0xae   :  { %482 = vmatpush.msra.mxu2 %v450_v36  ;;  %819 = vst.msk [vmem:[%s1262_s7 + $0x10] sm:$0xff] %vm154_vm0, %v450_v36 }
  0xaf   :  { %791 = vmatmul.msk.f32.vlgmr.msra.gmra.mxu2 %vm460_vm9, %v1116_v32 }
  0xb0   :  { %538 = vmatpush.msrb.mxu2 %v416_v42  ;;  %v838_v42 = vld [vmem:[%s1263_s6 + $0x3] ss:$0 sm:$0xff] }
  0xb2   :  { %539 = vmatpush.msrb.mxu2 %v415_v43 }
  0xb4   :  { %540 = vmatpush.msrb.mxu2 %v414_v44 }
  0xb6   :  { %541 = vmatpush.msrb.mxu2 %v413_v45 }
  0xb7   :  { %792 = vmatmul.msk.f32.gmra.mxu2 %vm460_vm9, %v1126_v39 }
  0xb8   :  { %542 = vmatpush.msrb.mxu2 %v412_v46 }
  0xba   :  { %543 = vmatpush.msrb.mxu2 %v411_v54  ;;  %v797_v54 = vld [vmem:[%s1261_s5 + $0x60] sm:$0xff] }
  0xbc   :  { %544 = vmatpush.msrb.mxu2 %v410_v55  ;;  %v808_v55 = vld [vmem:[%s1261_s5 + $0xb8] sm:$0xff] }
  0xbe   :  { %545 = vmatpush.msrb.mxu2 %v409_v56  ;;  %v805_v56 = vld [vmem:[%s1261_s5 + $0xa0] sm:$0xff] }
  0xc0   :  { %658 = vmatpush.msra.mxu2 %v800_v29 }
  0xc2   :  { %659 = vmatpush.msra.mxu2 %v799_v30 }
 0x104   :  { %v1151_v48 = vpop.f32.mrf.mxu1 }
 0x10c   :  { %v1155_v51 = vpop.f32.mrf.mxu1 }
 0x132   :  { %v484_v49 = vpop.f32.mrf.mxu2 }
 0x133   :  { %v485_v50 = vadd.f32 %v484_v49, %v1151_v48 }
 0x135   :  { %793 = vmatmul.msk.f32.vlgmr.msra.gmra.mxu3 %vm154_vm0, %v485_v50 }
 0x13a   :  { %v487_v52 = vpop.f32.mrf.mxu2 }
 0x13b   :  { %v488_v53 = vadd.f32 %v487_v52, %v1155_v51 }
 0x13d   :  { %794 = vmatmul.msk.f32.gmra.mxu3 %vm154_vm0, %v488_v53  ;;  %v798_v53 = vld [vmem:[%s1261_s5 + $0x68] sm:$0xff] }
 0x13e   :  { %660 = vmatpush.msra.mxu2 %v798_v53 }
 0x140   :  { %661 = vmatpush.msra.mxu2 %v797_v54 }
 0x1b8   :  { %v514_v58 = vpop.f32.mrf.mxu3 }
 0x1b9   :  { %v515_v59 = vadd.f32 %v835_v57, %v514_v58 }
 0x1bb   :  { %v520_v60 = vmax.f32 %v515_v59, 0.0 }
 0x1bd   :  { %795 = vmatmul.msk.f32.vlgmr.msrb.gmra.mxu2 %vm523_vm11, %v520_v60 }
 0x1c0   :  { %v517_v61 = vpop.f32.mrf.mxu3 }
 0x1c1   :  { %v518_v62 = vadd.f32 %v835_v57, %v517_v61  ;;  %v804_v57 = vld [vmem:[%s1261_s5 + $0x98] sm:$0xff] }
 0x1c3   :  { %v521_v63 = vmax.f32 %v518_v62, 0.0  ;;  %v803_v62 = vld [vmem:[%s1261_s5 + $0x90] sm:$0xff] }
 0x1c5   :  { %796 = vmatmul.msk.f32.gmra.mxu2 %vm523_vm11, %v521_v63  ;;  %v802_v63 = vld [vmem:[%s1261_s5 + $0x88] sm:$0xff] }
 0x240   :  { %v547_v0 = vpop.f32.mrf.mxu2 }
 0x241   :  { %v548_v2 = vadd.f32 %v836_v1, %v547_v0 }
 0x243   :  { %v553_v6 = vsel %vm154_vm0, %v548_v2, 0.0 }
 0x248   :  { %v550_v4 = vpop.f32.mrf.mxu2 }
 0x249   :  { %v551_v5 = vadd.f32 %v836_v1, %v550_v4 }
 0x24b   :  { %v554_v7 = vsel %vm154_vm0, %v551_v5, 0.0 }
 0x24c   :  { %v555_v8 = vadd.f32 %v554_v7, %v553_v6 }
 0x24e   :  { %v556_v9 = vrot.slane %v555_v8, 4 }
 0x250   :  { %v557_v3 = vadd.f32 %v556_v9, %v555_v8  ;;  %v840_v8 = vld [vmem:[%s1263_s6 + $0x5] ss:$0 sm:$0xff] }
 0x252   :  { %v558_v10 = vrot.slane %v557_v3, 2 }
 0x254   :  { %v559_v11 = vadd.f32 %v558_v10, %v557_v3 }
 0x256   :  { %v560_v12 = vrot.slane %v559_v11, 1 }
 0x258   :  { %v561_v13 = vadd.f32 %v560_v12, %v559_v11 }
 0x25a   :  { %v562_v14 = vmul.f32 0.0625, %v561_v13 }
 0x25c   :  { %v563_v15 = vsub.f32 %v548_v2, %v562_v14  ;;  %v564_v16 = vsub.f32 %v551_v5, %v562_v14 }
 0x25e   :  { %v565_v18 = vmul.f32 %v563_v15, %v563_v15  ;;  %v566_v19 = vmul.f32 %v564_v16, %v564_v16 }
 0x260   :  { %v567_v20 = vsel %vm154_vm0, %v565_v18, 0.0  ;;  %v568_v21 = vsel %vm154_vm0, %v566_v19, 0.0 }
 0x261   :  { %v569_v22 = vadd.f32 %v568_v21, %v567_v20 }
 0x263   :  { %v570_v23 = vrot.slane %v569_v22, 4 }
 0x265   :  { %v571_v47 = vadd.f32 %v570_v23, %v569_v22 }
 0x267   :  { %v572_v24 = vrot.slane %v571_v47, 2 }
 0x269   :  { %v573_v25 = vadd.f32 %v572_v24, %v571_v47 }
 0x26b   :  { %v574_v26 = vrot.slane %v573_v25, 1 }
 0x26d   :  { %v575_v17 = vadd.f32 %v574_v26, %v573_v25 }
 0x26f   :  { %v576_v27 = vmul.f32 0.0625, %v575_v17 }
 0x271   :  { %v577_v28 = vadd.f32 1e-05, %v576_v27 }
 0x273   :  { %843 = vrsqrt.f32 %v577_v28  ;;  %vm584_vm13 = vweird.f32 %v577_v28 }
 0x279   :  { %v844_v31 = vpop.eup %843 }
 0x27a   :  { %v579_v33 = vmul.f32 %v844_v31, %v577_v28  ;;  %vm585_vm12 = vweird.f32 %v844_v31 }
 0x27b   :  { %vm586_vm14 = vmor %vm584_vm13, %vm585_vm12 }
 0x27c   :  { %v580_v34 = vmul.f32 %v844_v31, %v579_v33 }
 0x27e   :  { %v581_v35 = vmul.f32 0.5, %v580_v34 }
 0x280   :  { %v582_v36 = vsub.f32 1.5, %v581_v35 }
 0x282   :  { %v583_v37 = vmul.f32 %v844_v31, %v582_v36 }
 0x284   :  { %v587_v40 = vsel %vm586_vm14, %v844_v31, %v583_v37 }
 0x285   :  { %v589_v41 = vmul.f32 %v587_v40, %v564_v16  ;;  %v588_v43 = vmul.f32 %v587_v40, %v563_v15 }
 0x287   :  { %v592_v44 = vmul.f32 %v837_v38, %v589_v41  ;;  %v591_v45 = vmul.f32 %v837_v38, %v588_v43  ;;  %v841_v43 = vld [vmem:[%s1263_s6 + $0x6] ss:$0 sm:$0xff] }
 0x289   :  { %v595_v46 = vadd.f32 %v838_v42, %v592_v44  ;;  %v594_v49 = vadd.f32 %v838_v42, %v591_v45 }
 0x28b   :  { %v597_v50 = vmax.f32 %v595_v46, 0.0  ;;  %v596_v52 = vmax.f32 %v594_v49, 0.0  ;;  %v842_v49 = vld [vmem:[%s1263_s6 + $0x7] ss:$0 sm:$0xff] }
 0x28d   :  { %630 = vmatpush.msrb.mxu3 %v597_v50 }
 0x28f   :  { %631 = vmatpush.msrb.mxu3 %v596_v52 }
 0x290   :  { %813 = vmatmul.msk.f32.vlgmr.msrb.gmra.mxu3 %vm460_vm9, %v1116_v32  ;;  %v807_v32 = vld [vmem:[%s1261_s5 + $0xb0] sm:$0xff] }
 0x291   :  { %686 = vmatpush.msra.mxu3 %v808_v55 }
 0x293   :  { %687 = vmatpush.msra.mxu3 %v807_v32 }
 0x298   :  { %814 = vmatmul.msk.f32.gmra.mxu3 %vm460_vm9, %v1126_v39  ;;  %v806_v39 = vld [vmem:[%s1261_s5 + $0xa8] sm:$0xff] }
 0x299   :  { %688 = vmatpush.msra.mxu3 %v806_v39 }
 0x29b   :  { %689 = vmatpush.msra.mxu3 %v805_v56 }
 0x29d   :  { %690 = vmatpush.msra.mxu3 %v804_v57 }
 0x29f   :  { %691 = vmatpush.msra.mxu3 %v803_v62 }
 0x2a1   :  { %692 = vmatpush.msra.mxu3 %v802_v63 }
 0x313   :  { %v633_v58 = vpop.f32.mrf.mxu3 }
 0x314   :  { %v634_v59 = vadd.f32 %v633_v58, %v1151_v48  ;;  %v801_v48 = vld [vmem:[%s1261_s5 + $0x80] sm:$0xff] }
 0x315   :  { %693 = vmatpush.msra.mxu3 %v801_v48 }
 0x316   :  { %815 = vmatmul.msk.f32.vlgmr.msra.gmra.mxu2 %vm154_vm0, %v634_v59 }
 0x31b   :  { %v636_v60 = vpop.f32.mrf.mxu3 }
 0x31c   :  { %v637_v61 = vadd.f32 %v636_v60, %v1155_v51  ;;  %v839_v51 = vld [vmem:[%s1263_s6 + $0x4] ss:$0 sm:$0xff] }
 0x31e   :  { %816 = vmatmul.msk.f32.gmra.mxu2 %vm154_vm0, %v637_v61 }
 0x399   :  { %v663_v0 = vpop.f32.mrf.mxu2 }
 0x39a   :  { %v664_v1 = vadd.f32 %v839_v51, %v663_v0 }
 0x39c   :  { %v669_v2 = vmax.f32 %v664_v1, 0.0 }
 0x39e   :  { %817 = vmatmul.msk.f32.vlgmr.msra.gmra.mxu3 %vm523_vm11, %v669_v2 }
 0x3a1   :  { %v666_v4 = vpop.f32.mrf.mxu2 }
 0x3a2   :  { %v667_v5 = vadd.f32 %v839_v51, %v666_v4 }
 0x3a4   :  { %v670_v6 = vmax.f32 %v667_v5, 0.0 }
 0x3a6   :  { %818 = vmatmul.msk.f32.gmra.mxu3 %vm523_vm11, %v670_v6 }
 0x421   :  { %v695_v7 = vpop.f32.mrf.mxu3 }
 0x422   :  { %v696_v9 = vadd.f32 %v840_v8, %v695_v7 }
 0x424   :  { %v701_v11 = vsel %vm154_vm0, %v696_v9, 0.0 }
 0x429   :  { %v698_v3 = vpop.f32.mrf.mxu3 }
 0x42a   :  { %v699_v10 = vadd.f32 %v840_v8, %v698_v3 }
 0x42c   :  { %v702_v12 = vsel %vm154_vm0, %v699_v10, 0.0 }
 0x42d   :  { %v703_v13 = vadd.f32 %v702_v12, %v701_v11 }
 0x42f   :  { %v704_v14 = vrot.slane %v703_v13, 4 }
 0x431   :  { %v705_v15 = vadd.f32 %v704_v14, %v703_v13 }
 0x433   :  { %v706_v16 = vrot.slane %v705_v15, 2 }
 0x435   :  { %v707_v18 = vadd.f32 %v706_v16, %v705_v15 }
 0x437   :  { %v708_v19 = vrot.slane %v707_v18, 1 }
 0x439   :  { %v709_v20 = vadd.f32 %v708_v19, %v707_v18 }
 0x43b   :  { %v710_v21 = vmul.f32 0.0625, %v709_v20 }
 0x43d   :  { %v711_v22 = vsub.f32 %v696_v9, %v710_v21  ;;  %v712_v23 = vsub.f32 %v699_v10, %v710_v21 }
 0x43f   :  { %v713_v47 = vmul.f32 %v711_v22, %v711_v22  ;;  %v714_v24 = vmul.f32 %v712_v23, %v712_v23 }
 0x441   :  { %v715_v25 = vsel %vm154_vm0, %v713_v47, 0.0  ;;  %v716_v26 = vsel %vm154_vm0, %v714_v24, 0.0 }
 0x442   :  { %v717_v17 = vadd.f32 %v716_v26, %v715_v25 }
 0x444   :  { %v718_v27 = vrot.slane %v717_v17, 4 }
 0x446   :  { %v719_v28 = vadd.f32 %v718_v27, %v717_v17 }
 0x448   :  { %v720_v29 = vrot.slane %v719_v28, 2 }
 0x44a   :  { %v721_v30 = vadd.f32 %v720_v29, %v719_v28 }
 0x44c   :  { %v722_v31 = vrot.slane %v721_v30, 1 }
 0x44e   :  { %v723_v33 = vadd.f32 %v722_v31, %v721_v30 }
 0x450   :  { %v724_v34 = vmul.f32 0.0625, %v723_v33 }
 0x452   :  { %v725_v35 = vadd.f32 1e-05, %v724_v34 }
 0x454   :  { %845 = vrsqrt.f32 %v725_v35  ;;  %vm732_vm1 = vweird.f32 %v725_v35 }
 0x45a   :  { %v846_v36 = vpop.eup %845 }
 0x45b   :  { %v727_v37 = vmul.f32 %v846_v36, %v725_v35  ;;  %vm733_vm15 = vweird.f32 %v846_v36 }
 0x45c   :  { %vm734_vm2 = vmor %vm732_vm1, %vm733_vm15 }
 0x45d   :  { %v728_v38 = vmul.f32 %v846_v36, %v727_v37 }
 0x45f   :  { %v729_v40 = vmul.f32 0.5, %v728_v38 }
 0x461   :  { %v730_v41 = vsub.f32 1.5, %v729_v40 }
 0x463   :  { %v731_v42 = vmul.f32 %v846_v36, %v730_v41 }
 0x465   :  { %v735_v44 = vsel %vm734_vm2, %v846_v36, %v731_v42 }
 0x466   :  { %v736_v45 = vmul.f32 %v735_v44, %v711_v22  ;;  %v737_v46 = vmul.f32 %v735_v44, %v712_v23 }
 0x468   :  { %v739_v50 = vmul.f32 %v841_v43, %v736_v45  ;;  %v740_v52 = vmul.f32 %v841_v43, %v737_v46 }
 0x46a   :  { %v742_v53 = vadd.f32 %v842_v49, %v739_v50  ;;  %v743_v54 = vadd.f32 %v842_v49, %v740_v52 }
 0x46c   :  { %744 = vst.msk [vmem:[%s1262_s7] sm:$0xff] %vm154_vm0, %v742_v53 }
 0x46d   :  { %745 = vst.msk [vmem:[%s1262_s7 + $0x8] sm:$0xff] %vm154_vm0, %v743_v54 }

</bundles_post_ra>
